<compile_context>
chip_gen: v5e
topology: v5e:2x2
jax: 0.10.0
libtpu: 0.0.40
codegen_flags: <defaults>
</compile_context>

<pallas_src>
import functools
import math

import jax
import jax.numpy as jnp
from jax.experimental import pallas as pl
from jax.experimental.pallas import tpu as pltpu


# ----------------------------------------------------------------------------
# Pallas kernel: integer softmax (_forward_infer hot path)
# ----------------------------------------------------------------------------
def _int_softmax_kernel(x_ref, o_ref, *, x0, inv_x0, x0_pow2, n_x0, const_n,
                        out_scale, div_bit, lower, upper):
    x = x_ref[...].astype(jnp.float32)

    # optional div_shift (previous layer's scale differs from quantizer_x)
    if div_bit is not None:
        x = jnp.clip(jnp.round(x * div_bit), lower, upper)

    # x_int = x_int - max(x_int, dim=-1)
    x = x - jnp.max(x, axis=-1, keepdims=True)

    # --- int_exp_shift ---
    # x + x>>1 - x>>4  (power-of-two scalings are exact in f32)
    x = x + jnp.floor(x * 0.5) - jnp.floor(x * 0.0625)
    x = jnp.maximum(x, n_x0)                      # clamp to const_n * x0

    # q = floor(x / x0) without a per-element f32 divide.
    q = jnp.floor(x * inv_x0)
    if not x0_pow2:
        # one-step fix-up: true remainder must lie in (x0, 0]  (x0 < 0)
        r0 = x - x0 * q
        q = q + jnp.where(r0 <= x0, 1.0, 0.0) - jnp.where(r0 > 0.0, 1.0, 0.0)
    r = x - x0 * q
    # exp2 runs on the EUP (otherwise-idle slot) -- keep it.
    exp_int = jnp.maximum(jnp.floor((r * 0.5 - x0) * jnp.exp2(const_n - q)), 0.0)

    # --- normalisation ---
    exp_sum = jnp.minimum(jnp.sum(exp_int, axis=-1, keepdims=True), 2.0 ** 31 - 1.0)
    # fold 2^-(31-bit+1) into the per-row factor (pow-2 scale -> exact, bit-identical)
    f2 = jnp.floor((2.0 ** 31 - 1.0) / exp_sum) * out_scale
    o_ref[...] = jnp.floor(exp_int * f2).astype(o_ref.dtype)


# ----------------------------------------------------------------------------
# Tiling heuristics (generation-aware)
# ----------------------------------------------------------------------------
def _round_up(v, m):
    return ((v + m - 1) // m) * m


def _chip_config():
    """Pick block-size targets per chip generation (via VMEM capacity)."""
    cfg = dict(target_block_bytes=2 << 20,     # v5e/v6e: big streaming blocks
               vmem_budget_bytes=12 << 20,     # 2 in + 2 out pipeline buffers
               vmem_limit_bytes=32 << 20,      # explicit scoped-VMEM limit
               min_grid=1,                     # 1 TC: grid is a serial loop
               even_grid=False)
    try:
        info = pltpu.get_tpu_info()
        vmem = int(info.vmem_capacity_bytes)
        if vmem <= (64 << 20):                 # v7x-class: 64 MiB VMEM, 2 TCs
            cfg.update(target_block_bytes=4 << 20,
                       vmem_budget_bytes=16 << 20,
                       vmem_limit_bytes=24 << 20,
                       min_grid=4,
                       even_grid=True)
    except Exception:
        pass                                   # conservative defaults above
    return cfg


def _choose_tile_rows(R, D, *, itemsize=4, target_block_bytes, vmem_budget_bytes,
                      min_grid, even_grid):
    """Pick a row tile: big blocks for HBM roofline, but (a) 2x double-buffered
    in + out stays within a conservative VMEM budget and (b) on 2-TC chips keep
    an even grid of >= min_grid steps for megacore sharding."""
    bytes_per_row = max(D, 128) * itemsize     # VMEM lane layout pads to 128
    tr = max(8, target_block_bytes // bytes_per_row)
    tr = min(tr, max(8, vmem_budget_bytes // (4 * bytes_per_row)))
    if min_grid > 1 and R > min_grid * 8:
        tr = min(tr, max(8, R // min_grid))
    tr = min(tr, _round_up(max(R, 1), 8))      # don't pad rows far past R
    tr = max(8, (tr // 8) * 8)                 # f32 sublane multiple
    if even_grid:
        g = -(-R // tr)
        if g > 1 and g % 2 == 1:
            tr2 = max(8, _round_up(-(-R // (g + 1)), 8))
            if (-(-R // tr2)) % 2 == 0:
                tr = tr2
    return int(tr)


# ----------------------------------------------------------------------------
# Wrapper
# ----------------------------------------------------------------------------
def int_softmax_pallas(x, *, scale_x, const_n=15, const_bit=16,
                       div_bit=None, lower=-128.0, upper=127.0,
                       tile_rows=None, vmem_limit_bytes=None):
    """x: float32 array of integer-valued entries; integer softmax over last axis."""
    orig_shape = x.shape
    D = int(orig_shape[-1])
    x2d = x.reshape(-1, D).astype(jnp.float32)
    R = int(x2d.shape[0])

    cfg = _chip_config()
    if tile_rows is None:
        tile_rows = _choose_tile_rows(
            R, D,
            target_block_bytes=cfg["target_block_bytes"],
            vmem_budget_bytes=cfg["vmem_budget_bytes"],
            min_grid=cfg["min_grid"], even_grid=cfg["even_grid"])
    if vmem_limit_bytes is None:
        vmem_limit_bytes = cfg["vmem_limit_bytes"]

    # cdiv grid: last partial row block reads unspecified rows (harmless,
    # per-row independent math) and its out-of-bounds writes are dropped.
    grid = pl.cdiv(R, tile_rows)

    x0 = float(math.floor(-1.0 / float(scale_x)))   # x0_int as a Python constant
    abs_x0 = int(-x0)
    x0_pow2 = abs_x0 > 0 and (abs_x0 & (abs_x0 - 1)) == 0

    kernel = functools.partial(
        _int_softmax_kernel,
        x0=x0,
        inv_x0=1.0 / x0,
        x0_pow2=x0_pow2,
        n_x0=float(const_n) * x0,
        const_n=float(const_n),
        out_scale=2.0 ** (-(31 - const_bit + 1)),
        div_bit=None if div_bit is None else float(div_bit),
        lower=float(lower), upper=float(upper))

    out2d = pl.pallas_call(
        kernel,
        out_shape=jax.ShapeDtypeStruct((R, D), jnp.float32),
        grid_spec=pltpu.PrefetchScalarGridSpec(
            num_scalar_prefetch=0,
            grid=(grid,),
            in_specs=[pl.BlockSpec((tile_rows, D), lambda i: (i, 0))],
            out_specs=pl.BlockSpec((tile_rows, D), lambda i: (i, 0)),
        ),
        compiler_params=pltpu.CompilerParams(
            dimension_semantics=("parallel",),
            vmem_limit_bytes=int(vmem_limit_bytes)),
    )(x2d)

    return out2d.reshape(orig_shape)


# ----------------------------------------------------------------------------
# Module wrapper mirroring OIntInferSoftmax's two-phase forward
# ----------------------------------------------------------------------------
class OIntInferSoftmaxJAX:
    def __init__(self, scale_x, input_shape, output_shape,
                 bit_lower_bound=-128.0, bit_upper_bound=127.0):
        self.ops_type = "softmax"
        self.const_n = 15
        self.const_bit = 16
        self.scale_x = float(scale_x)                 # quantizer_x.scaler
        self.scale_y = 1.0 / 2 ** (self.const_bit - 1)
        self.bit_lower_bound = float(bit_lower_bound)
        self.bit_upper_bound = float(bit_upper_bound)
        self.input_shape = tuple(input_shape)
        self.output_shape = tuple(output_shape)
        self.div_bit = None
        self.int_infer_flag = False

    def __call__(self, x):
        if self.int_infer_flag:
            return self._forward_infer(x)
        return self._forward_scale(x)

    def _forward_scale(self, scale_x_tensor):
        # scale-propagation phase: plain JAX glue (not a kernel)
        assert tuple(scale_x_tensor.shape) == self.input_shape
        scale_last_layer = float(jnp.unique(scale_x_tensor)[0])
        if scale_last_layer != self.scale_x:
            self.div_bit = float(jnp.round(scale_last_layer / self.scale_x))
        self.int_infer_flag = True
        return jnp.ones(self.output_shape, dtype=jnp.float32) * self.scale_y

    def _forward_infer(self, x_int):
        return int_softmax_pallas(
            x_int,
            scale_x=self.scale_x,
            const_n=self.const_n,
            const_bit=self.const_bit,
            div_bit=self.div_bit,
            lower=self.bit_lower_bound,
            upper=self.bit_upper_bound,
        )


# pure-JAX reference for sanity checking (mirrors the PyTorch math)
def _ref_int_softmax(x, scale_x, const_n, const_bit, div_bit, lower, upper):
    x = x.astype(jnp.float32)
    if div_bit is not None:
        x = jnp.clip(jnp.round(x * div_bit), lower, upper)
    x = x - jnp.max(x, axis=-1, keepdims=True)
    x = x + jnp.floor(x / 2.0) - jnp.floor(x / 16.0)
    x0 = jnp.floor(jnp.float32(-1.0 / scale_x))
    x = jnp.maximum(x, const_n * x0)
    q = jnp.floor(x / x0)
    r = x - x0 * q
    e = jnp.maximum(jnp.floor((r / 2.0 - x0) * jnp.exp2(const_n - q)), 0.0)
    s = jnp.minimum(jnp.sum(e, axis=-1, keepdims=True), 2.0 ** 31 - 1.0)
    f = jnp.floor((2.0 ** 31 - 1.0) / s)
    return jnp.floor(e * f / 2.0 ** (31 - const_bit + 1))


if __name__ == "__main__":
    # small attention-like shape: [batch=2, heads=4, seq=8, softmax_dim=128]
    B, H, S, D = 2, 4, 8, 128
    input_shape = (B, H, S, D)
    output_shape = (B, H, S, D)

    scale_x = 1.0 / 16.0            # quantizer_x scale (|x0| = 16, power of two)
    scale_last_layer = 1.0 / 8.0    # previous layer scale (differs -> div_bit=2)

    mod = OIntInferSoftmaxJAX(scale_x, input_shape, output_shape,
                              bit_lower_bound=-128.0, bit_upper_bound=127.0)

    # phase 1: scale propagation (plain JAX glue, sets div_bit / int_infer_flag)
    scale_in = jnp.full(input_shape, scale_last_layer, dtype=jnp.float32)
    scale_out = mod(scale_in)
    jax.block_until_ready(scale_out)

    # phase 2: integer inference path (Pallas kernel)
    key = jax.random.PRNGKey(0)
    x_fp = jax.random.normal(key, input_shape, dtype=jnp.float32) * 2.0
    x_int = jnp.clip(jnp.round(x_fp / scale_last_layer), -128.0, 127.0)

    y = mod(x_int)
    jax.block_until_ready(y)

    y_ref = _ref_int_softmax(x_int, scale_x, mod.const_n, mod.const_bit,
                             mod.div_bit, mod.bit_lower_bound, mod.bit_upper_bound)
    assert jnp.array_equal(y, y_ref), "mismatch vs reference (main shape)"

    # ragged-shape check: partial row block + non-128 lane dim (no pad/slice path)
    x_fp2 = jax.random.normal(jax.random.PRNGKey(1), (2, 3, 5, 100), jnp.float32) * 2.0
    x_int2 = jnp.clip(jnp.round(x_fp2 / scale_last_layer), -128.0, 127.0)
    y2 = int_softmax_pallas(x_int2, scale_x=scale_x, div_bit=2.0)
    jax.block_until_ready(y2)
    y2_ref = _ref_int_softmax(x_int2, scale_x, 15, 16, 2.0, -128.0, 127.0)
    assert jnp.array_equal(y2, y2_ref), "mismatch vs reference (ragged shape)"

    # non-power-of-two x0 check: exercises the reciprocal-multiply + fix-up path
    scale_x3 = 0.1                  # x0 = floor(-10) = -10, not a power of two
    x_int3 = jnp.clip(jnp.round(x_fp / scale_x3), -128.0, 127.0)
    y3 = int_softmax_pallas(x_int3, scale_x=scale_x3, div_bit=None)
    jax.block_until_ready(y3)
    y3_ref = _ref_int_softmax(x_int3, scale_x3, 15, 16, None, -128.0, 127.0)
    assert jnp.array_equal(y3, y3_ref), "mismatch vs reference (non-pow2 x0)"

    print("KERNEL_OK")
</pallas_src>

<mosaic_0001>
module attributes {stable_mosaic.version = 11 : i64} {
  func.func @_int_softmax_kernel(%arg0: i32, %arg1: memref<64x128xf32, #tpu.memory_space<vmem>>, %arg2: memref<64x128xf32, #tpu.memory_space<vmem>>) attributes {dimension_semantics = [#tpu.dimension_semantics<parallel>], iteration_bounds = array<i64: 1>, scalar_prefetch = 0 : i64, scratch_operands = 0 : i64, tpu.core_type = #tpu.core_type<tc>, window_params = [{transform_indices = @transform_0, window_bounds = array<i64: 64, 128>}, {transform_indices = @transform_1, window_bounds = array<i64: 64, 128>}]} {
    %c0 = arith.constant 0 : index
    %c0_0 = arith.constant 0 : index
    %0 = vector.load %arg1[%c0, %c0_0] : memref<64x128xf32, #tpu.memory_space<vmem>>, vector<64x128xf32>
    %cst = arith.constant 2.000000e+00 : f32
    %1 = vector.broadcast %cst : f32 to vector<64x128xf32>
    %2 = arith.mulf %0, %1 : vector<64x128xf32>
    %3 = math.roundeven %2 : vector<64x128xf32>
    %cst_1 = arith.constant -1.280000e+02 : f32
    %cst_2 = arith.constant 1.270000e+02 : f32
    %4 = vector.broadcast %cst_1 : f32 to vector<64x128xf32>
    %5 = arith.maximumf %4, %3 : vector<64x128xf32>
    %6 = vector.broadcast %cst_2 : f32 to vector<64x128xf32>
    %7 = arith.minimumf %6, %5 : vector<64x128xf32>
    %cst_3 = arith.constant dense<0xFF800000> : vector<64xf32>
    %8 = vector.multi_reduction <maximumf>, %7, %cst_3 [1] : vector<64x128xf32> to vector<64xf32>
    %9 = vector.shape_cast %8 : vector<64xf32> to vector<64x1xf32>
    %10 = vector.broadcast %9 : vector<64x1xf32> to vector<64x128xf32>
    %11 = arith.subf %7, %10 : vector<64x128xf32>
    %cst_4 = arith.constant 5.000000e-01 : f32
    %12 = vector.broadcast %cst_4 : f32 to vector<64x128xf32>
    %13 = arith.mulf %11, %12 : vector<64x128xf32>
    %14 = math.floor %13 : vector<64x128xf32>
    %15 = arith.addf %11, %14 : vector<64x128xf32>
    %cst_5 = arith.constant 6.250000e-02 : f32
    %16 = vector.broadcast %cst_5 : f32 to vector<64x128xf32>
    %17 = arith.mulf %11, %16 : vector<64x128xf32>
    %18 = math.floor %17 : vector<64x128xf32>
    %19 = arith.subf %15, %18 : vector<64x128xf32>
    %cst_6 = arith.constant -2.400000e+02 : f32
    %20 = vector.broadcast %cst_6 : f32 to vector<64x128xf32>
    %21 = arith.maximumf %19, %20 : vector<64x128xf32>
    %cst_7 = arith.constant -6.250000e-02 : f32
    %22 = vector.broadcast %cst_7 : f32 to vector<64x128xf32>
    %23 = arith.mulf %21, %22 : vector<64x128xf32>
    %24 = math.floor %23 : vector<64x128xf32>
    %cst_8 = arith.constant -1.600000e+01 : f32
    %25 = vector.broadcast %cst_8 : f32 to vector<64x128xf32>
    %26 = arith.mulf %25, %24 : vector<64x128xf32>
    %27 = arith.subf %21, %26 : vector<64x128xf32>
    %cst_9 = arith.constant 5.000000e-01 : f32
    %28 = vector.broadcast %cst_9 : f32 to vector<64x128xf32>
    %29 = arith.mulf %27, %28 : vector<64x128xf32>
    %cst_10 = arith.constant -1.600000e+01 : f32
    %30 = vector.broadcast %cst_10 : f32 to vector<64x128xf32>
    %31 = arith.subf %29, %30 : vector<64x128xf32>
    %cst_11 = arith.constant 1.500000e+01 : f32
    %32 = vector.broadcast %cst_11 : f32 to vector<64x128xf32>
    %33 = arith.subf %32, %24 : vector<64x128xf32>
    %34 = math.exp2 %33 : vector<64x128xf32>
    %35 = arith.mulf %31, %34 : vector<64x128xf32>
    %36 = math.floor %35 : vector<64x128xf32>
    %cst_12 = arith.constant 0.000000e+00 : f32
    %37 = vector.broadcast %cst_12 : f32 to vector<64x128xf32>
    %38 = arith.maximumf %36, %37 : vector<64x128xf32>
    %cst_13 = arith.constant dense<0.000000e+00> : vector<64xf32>
    %39 = vector.multi_reduction <add>, %38, %cst_13 [1] : vector<64x128xf32> to vector<64xf32>
    %40 = vector.shape_cast %39 : vector<64xf32> to vector<64x1xf32>
    %cst_14 = arith.constant 2.14748365E+9 : f32
    %41 = vector.broadcast %cst_14 : f32 to vector<64x1xf32>
    %42 = arith.minimumf %40, %41 : vector<64x1xf32>
    %cst_15 = arith.constant 2.14748365E+9 : f32
    %43 = vector.broadcast %cst_15 : f32 to vector<64x1xf32>
    %44 = arith.divf %43, %42 : vector<64x1xf32>
    %45 = math.floor %44 : vector<64x1xf32>
    %cst_16 = arith.constant 1.52587891E-5 : f32
    %46 = vector.broadcast %cst_16 : f32 to vector<64x1xf32>
    %47 = arith.mulf %45, %46 : vector<64x1xf32>
    %48 = vector.broadcast %47 : vector<64x1xf32> to vector<64x128xf32>
    %49 = arith.mulf %38, %48 : vector<64x128xf32>
    %50 = math.floor %49 : vector<64x128xf32>
    %c0_17 = arith.constant 0 : index
    %c0_18 = arith.constant 0 : index
    %51 = vector.load %arg2[%c0_17, %c0_18] : memref<64x128xf32, #tpu.memory_space<vmem>>, vector<64x128xf32>
    tpu.vector_store %arg2[%c0_17, %c0_18], %50 {strides = array<i32>} : memref<64x128xf32, #tpu.memory_space<vmem>>, vector<64x128xf32>,
    return
  }
  func.func @transform_0(%arg0: i32) -> (i32, i32) {
    %c0_i32 = arith.constant 0 : i32
    %c0_i32_0 = arith.constant 0 : i32
    return %arg0, %c0_i32 : i32, i32
  }
  func.func @transform_1(%arg0: i32) -> (i32, i32) {
    %c0_i32 = arith.constant 0 : i32
    %c0_i32_0 = arith.constant 0 : i32
    return %arg0, %c0_i32 : i32, i32
  }
}

</mosaic_0001>

<bundles_post_ra>
// kernel: tpu_custom_call.1
= control target key start
LH: loop header
LB: loop body
LE: loop exit
PB: predicated region body
PF: predicated region fallthrough
CT: control target
= control target key end

     0   :  { %6 = vsyncpa [#allocation3], 0  ;;  %s796_s0 = inlined_call_operand.hbm [shape: f32[64,128], index: 0, kind: input, shape index: {}]   ;;  %s797_s1 = inlined_call_operand.hbm [shape: f32[64,128], index: 1, kind: output, shape index: {}]  }
   0x1   :  { %7 = vsyncpa [#allocation4], 0  ;;  %s12_s8 = sshll.u32 %s796_s0, 4  ;;  %s596_s9 = smov [#allocation2]   ;;  %s13_s8 = int_to_ptr.hbm [resolvable:$true] %s12_s8 }
   0x2   :  { %s14_s10 = sshll.u32 %s596_s9, 4  ;;  %s597_s11 = smov 128   ;;  %s15_s10 = int_to_ptr.vmem [resolvable:$true] %s14_s10 }
   0x3   :  { %s598_s12 = smov 8  }
   0x4   :  { %20 = dma.hbm_to_vmem [thread:$0]  %s13_s8, 1024, %s15_s10, [#allocation3], %s597_s11, %s597_s11, %s598_s12  }
   0x5   :  { %592 = dma.done.wait [#allocation3], 1024  }
   0x6   :  { %593 = vsyncadd [#allocation3], 4294966272  ;;  %v29_v0 = vld [vmem:[#allocation2 + $0x20] sm:$0xff]  ;;  %v27_v1 = vld [vmem:[#allocation2 + $0x10] sm:$0xff]  ;;  %s599_s0 = smov [#allocation5]   ;;  %s423_s16 = sshll.u32 %s797_s1, 4  ;;  %s424_s16 = int_to_ptr.hbm [resolvable:$true] %s423_s16 }
   0x7   :  { %v25_v2 = vld [vmem:[#allocation2] sm:$0xff]  ;;  %v37_v3 = vmul.f32 2.0, %v29_v0  ;;  %v35_v4 = vmul.f32 2.0, %v27_v1  ;;  %v30_v6 = vld [vmem:[#allocation2 + $0x28] sm:$0xff]  ;;  %v28_v7 = vld [vmem:[#allocation2 + $0x18] sm:$0xff]  ;;  %s421_s13 = sshll.u32 %s599_s0, 4  ;;  %s422_s13 = int_to_ptr.vmem [resolvable:$true] %s421_s13 }
   0x8   :  { %v33_v5 = vmul.f32 2.0, %v25_v2  ;;  %v26_v8 = vld [vmem:[#allocation2 + $0x8] sm:$0xff]  ;;  %v38_v9 = vmul.f32 2.0, %v30_v6  ;;  %v36_v10 = vmul.f32 2.0, %v28_v7  ;;  %v32_v47 = vld [vmem:[#allocation2 + $0x38] sm:$0xff]  ;;  %v31_v52 = vld [vmem:[#allocation2 + $0x30] sm:$0xff] }
   0x9   :  { %v476_v11 = vand.u32 2147483647, %v37_v3  ;;  %v478_v12 = vcvt.f32.s32 %v37_v3  ;;  %v460_v13 = vand.u32 2147483647, %v35_v4  ;;  %v616_v14 = vmul.f32 2.0, %v26_v8 }
   0xa   :  { %v481_v15 = vand.u32 2147483648, %v37_v3  ;;  %v462_v16 = vcvt.f32.s32 %v35_v4  ;;  %v444_v17 = vand.u32 2147483647, %v33_v5  ;;  %v446_v18 = vcvt.f32.s32 %v33_v5 }
   0xb   :  { %vm618_vm0 = vcmp.lt.f32.partialorder %v476_v11, 8388608.0  ;;  %v479_v20 = vcvt.s32.f32 %v478_v12  ;;  %vm622_vm1 = vcmp.lt.f32.partialorder %v460_v13, 8388608.0  ;;  %v465_v22 = vand.u32 2147483648, %v35_v4 }
   0xc   :  { %v463_v23 = vcvt.s32.f32 %v462_v16  ;;  %v447_v24 = vcvt.s32.f32 %v446_v18  ;;  %v449_v25 = vand.u32 2147483648, %v33_v5  ;;  %v484_v26 = vand.u32 2147483647, %v38_v9 }
   0xd   :  { %v480_v27 = vand.u32 2147483647, %v479_v20  ;;  %vm626_vm2 = vcmp.lt.f32.partialorder %v444_v17, 8388608.0  ;;  %v486_v29 = vcvt.f32.s32 %v38_v9  ;;  %v468_v30 = vand.u32 2147483647, %v36_v10 }
   0xe   :  { %v464_v31 = vand.u32 2147483647, %v463_v23  ;;  %v448_v32 = vand.u32 2147483647, %v447_v24  ;;  %v489_v33 = vand.u32 2147483648, %v38_v9  ;;  %v470_v34 = vcvt.f32.s32 %v36_v10 }
   0xf   :  { %v482_v35 = vor.u32 %v481_v15, %v480_v27  ;;  %vm630_vm3 = vcmp.lt.f32.partialorder %v484_v26, 8388608.0  ;;  %v487_v37 = vcvt.s32.f32 %v486_v29  ;;  %vm634_vm4 = vcmp.lt.f32.partialorder %v468_v30, 8388608.0 }
  0x10   :  { %v466_v39 = vor.u32 %v465_v22, %v464_v31  ;;  %v450_v40 = vor.u32 %v449_v25, %v448_v32  ;;  %v471_v41 = vcvt.s32.f32 %v470_v34  ;;  %v473_v42 = vand.u32 2147483648, %v36_v10 }
  0x11   :  { %v483_v43 = vsel %vm618_vm0, %v482_v35, %v37_v3  ;;  %v488_v44 = vand.u32 2147483647, %v487_v37  ;;  %v452_v45 = vand.u32 2147483647, %v616_v14  ;;  %v454_v46 = vcvt.f32.s32 %v616_v14 }
  0x12   :  { %v53_v48 = vmax.f32 %v483_v43, -128.0  ;;  %v467_v49 = vsel %vm622_vm1, %v466_v39, %v35_v4  ;;  %v451_v50 = vsel %vm626_vm2, %v450_v40, %v33_v5  ;;  %v472_v51 = vand.u32 2147483647, %v471_v41 }
  0x13   :  { %v51_v53 = vmax.f32 %v467_v49, -128.0  ;;  %v49_v54 = vmax.f32 %v451_v50, -128.0  ;;  %v490_v55 = vor.u32 %v489_v33, %v488_v44  ;;  %v457_v56 = vand.u32 2147483648, %v616_v14 }
  0x14   :  { %v61_v57 = vmin.f32 %v53_v48, 127.0  ;;  %v474_v58 = vor.u32 %v473_v42, %v472_v51  ;;  %v455_v59 = vcvt.s32.f32 %v454_v46  ;;  %v40_v60 = vmul.f32 2.0, %v32_v47 }
  0x15   :  { %v59_v61 = vmin.f32 %v51_v53, 127.0  ;;  %v57_v62 = vmin.f32 %v49_v54, 127.0  ;;  %v491_v63 = vsel %vm630_vm3, %v490_v55, %v38_v9  ;;  %v39_v0 = vmul.f32 2.0, %v31_v52 }
  0x16   :  { %73 = vmax.xlane.f32.xlu2 %v61_v57  ;;  %v54_v1 = vmax.f32 %v491_v63, -128.0  ;;  %v475_v2 = vsel %vm634_vm4, %v474_v58, %v36_v10  ;;  %v456_v3 = vand.u32 2147483647, %v455_v59  ;;  %vm453_vm5 = vcmp.lt.f32.partialorder %v452_v45, 8388608.0 }
  0x17   :  { %69 = vmax.xlane.f32.xlu1 %v59_v61  ;;  %65 = vmax.xlane.f32.xlu0 %v57_v62  ;;  %v52_v4 = vmax.f32 %v475_v2, -128.0  ;;  %v502_v5 = vcvt.f32.s32 %v40_v60  ;;  %v500_v7 = vand.u32 2147483647, %v40_v60  ;;  %v494_v8 = vcvt.f32.s32 %v39_v0 }
  0x18   :  { %v458_v6 = vor.u32 %v457_v56, %v456_v3  ;;  %v505_v12 = vand.u32 2147483648, %v40_v60  ;;  %v492_v13 = vand.u32 2147483647, %v39_v0  ;;  %v62_v15 = vmin.f32 %v54_v1, 127.0 }
  0x19   :  { %v503_v11 = vcvt.s32.f32 %v502_v5  ;;  %v495_v16 = vcvt.s32.f32 %v494_v8  ;;  %v497_v17 = vand.u32 2147483648, %v39_v0  ;;  %v60_v18 = vmin.f32 %v52_v4, 127.0 }
  0x1a   :  { %v459_v9 = vsel %vm453_vm5, %v458_v6, %v616_v14  ;;  %vm501_vm6 = vcmp.lt.f32.partialorder %v500_v7, 8388608.0  ;;  %vm493_vm7 = vcmp.lt.f32.partialorder %v492_v13, 8388608.0 }
  0x1b   :  { %v50_v19 = vmax.f32 %v459_v9, -128.0  ;;  %v504_v10 = vand.u32 2147483647, %v503_v11  ;;  %v496_v20 = vand.u32 2147483647, %v495_v16 }
  0x1d   :  { %v58_v21 = vmin.f32 %v50_v19, 127.0  ;;  %v506_v22 = vor.u32 %v505_v12, %v504_v10  ;;  %v498_v23 = vor.u32 %v497_v17, %v496_v20 }
  0x1e   :  { %75 = vmax.xlane.f32.xlu2 %v62_v15 }
  0x1f   :  { %71 = vmax.xlane.f32.xlu1 %v60_v18  ;;  %67 = vmax.xlane.f32.xlu0 %v58_v21  ;;  %v507_v24 = vsel %vm501_vm6, %v506_v22, %v40_v60  ;;  %v499_v26 = vsel %vm493_vm7, %v498_v23, %v39_v0 }
  0x20   :  { %v652_v25 = vmax.f32 %v507_v24, -128.0  ;;  %v654_v27 = vmax.f32 %v499_v26, -128.0 }
  0x22   :  { %v64_v14 = vmin.f32 %v652_v25, 127.0  ;;  %v63_v28 = vmin.f32 %v654_v27, 127.0 }
  0x27   :  { %79 = vmax.xlane.f32.xlu1 %v64_v14  ;;  %77 = vmax.xlane.f32.xlu0 %v63_v28 }
  0x89   :  { %v74_v29 = vpop.xlane.xlu2 %73 }
  0x8a   :  { %v85_v30 = vsub.f32 %v61_v57, %v74_v29  ;;  %v70_v31 = vpop.xlane.xlu1 %69  ;;  %v66_v32 = vpop.xlane.xlu0 %65 }
  0x8b   :  { %v83_v33 = vsub.f32 %v59_v61, %v70_v31  ;;  %v81_v34 = vsub.f32 %v57_v62, %v66_v32 }
  0x8c   :  { %v93_v35 = vmul.f32 0.5, %v85_v30  ;;  %v117_v36 = vmul.f32 0.0625, %v85_v30 }
  0x8d   :  { %v91_v37 = vmul.f32 0.5, %v83_v33  ;;  %v115_v38 = vmul.f32 0.0625, %v83_v33  ;;  %v89_v39 = vmul.f32 0.5, %v81_v34  ;;  %v113_v40 = vmul.f32 0.0625, %v81_v34 }
  0x8e   :  { %v101_v41 = vfloor.f32 %v93_v35  ;;  %v125_v42 = vfloor.f32 %v117_v36 }
  0x8f   :  { %v99_v43 = vfloor.f32 %v91_v37  ;;  %v123_v44 = vfloor.f32 %v115_v38  ;;  %v97_v45 = vfloor.f32 %v89_v39  ;;  %v121_v49 = vfloor.f32 %v113_v40 }
  0x90   :  { %v109_v46 = vadd.f32 %v101_v41, %v85_v30 }
  0x91   :  { %v107_v47 = vadd.f32 %v99_v43, %v83_v33  ;;  %v105_v48 = vadd.f32 %v97_v45, %v81_v34  ;;  %v76_v50 = vpop.xlane.xlu2 %75 }
  0x92   :  { %v662_v51 = vsub.f32 %v109_v46, %v125_v42  ;;  %v86_v52 = vsub.f32 %v62_v15, %v76_v50  ;;  %v72_v53 = vpop.xlane.xlu1 %71  ;;  %v68_v54 = vpop.xlane.xlu0 %67 }
  0x93   :  { %v131_v55 = vsub.f32 %v107_v47, %v123_v44  ;;  %v129_v56 = vsub.f32 %v105_v48, %v121_v49  ;;  %v84_v57 = vsub.f32 %v60_v18, %v72_v53  ;;  %v82_v58 = vsub.f32 %v58_v21, %v68_v54 }
  0x94   :  { %v94_v59 = vmul.f32 0.5, %v86_v52  ;;  %v118_v60 = vmul.f32 0.0625, %v86_v52  ;;  %v141_v61 = vmax.f32 %v662_v51, -240.0 }
  0x95   :  { %v92_v62 = vmul.f32 0.5, %v84_v57  ;;  %v116_v63 = vmul.f32 0.0625, %v84_v57  ;;  %v90_v0 = vmul.f32 0.5, %v82_v58  ;;  %v114_v1 = vmul.f32 0.0625, %v82_v58 }
  0x96   :  { %v102_v2 = vfloor.f32 %v94_v59  ;;  %v126_v3 = vfloor.f32 %v118_v60  ;;  %v139_v4 = vmax.f32 %v131_v55, -240.0  ;;  %v137_v5 = vmax.f32 %v129_v56, -240.0 }
  0x97   :  { %v100_v6 = vfloor.f32 %v92_v62  ;;  %v124_v7 = vfloor.f32 %v116_v63  ;;  %v98_v8 = vfloor.f32 %v90_v0  ;;  %v667_v15 = vmul.f32 -0.0625, %v141_v61 }
  0x98   :  { %v110_v11 = vadd.f32 %v102_v2, %v86_v52  ;;  %v147_v12 = vmul.f32 -0.0625, %v139_v4  ;;  %v145_v13 = vmul.f32 -0.0625, %v137_v5  ;;  %v122_v17 = vfloor.f32 %v114_v1 }
  0x99   :  { %v108_v9 = vadd.f32 %v100_v6, %v84_v57  ;;  %v106_v16 = vadd.f32 %v98_v8, %v82_v58  ;;  %v157_v22 = vfloor.f32 %v667_v15 }
  0x9a   :  { %v134_v18 = vsub.f32 %v110_v11, %v126_v3  ;;  %v80_v19 = vpop.xlane.xlu1 %79  ;;  %v78_v10 = vpop.xlane.xlu0 %77  ;;  %v155_v20 = vfloor.f32 %v147_v12  ;;  %v153_v21 = vfloor.f32 %v145_v13 }
  0x9b   :  { %v132_v23 = vsub.f32 %v108_v9, %v124_v7  ;;  %v130_v24 = vsub.f32 %v106_v16, %v122_v17  ;;  %v88_v26 = vsub.f32 %v64_v14, %v80_v19  ;;  %v87_v29 = vsub.f32 %v63_v28, %v78_v10 }
  0x9c   :  { %v163_v30 = vmul.f32 -16.0, %v155_v20  ;;  %v195_v31 = vsub.f32 15.0, %v155_v20  ;;  %v161_v32 = vmul.f32 -16.0, %v153_v21  ;;  %v193_v33 = vsub.f32 15.0, %v153_v21 }
  0x9d   :  { %v96_v34 = vmul.f32 0.5, %v88_v26  ;;  %v120_v35 = vmul.f32 0.0625, %v88_v26  ;;  %v95_v36 = vmul.f32 0.5, %v87_v29  ;;  %v119_v37 = vmul.f32 0.0625, %v87_v29 }
  0x9e   :  { %v171_v38 = vsub.f32 %v139_v4, %v163_v30  ;;  %512 = vpow2.f32 %v195_v31  ;;  %v169_v39 = vsub.f32 %v137_v5, %v161_v32  ;;  %v142_v40 = vmax.f32 %v134_v18, -240.0 }
  0x9f   :  { %v104_v41 = vfloor.f32 %v96_v34  ;;  %v128_v42 = vfloor.f32 %v120_v35  ;;  %v103_v43 = vfloor.f32 %v95_v36  ;;  %v127_v25 = vfloor.f32 %v119_v37 }
  0xa0   :  { %v179_v14 = vmul.f32 0.5, %v171_v38  ;;  %v177_v44 = vmul.f32 0.5, %v169_v39  ;;  %514 = vpow2.f32 %v193_v33  ;;  %v150_v27 = vmul.f32 -0.0625, %v142_v40 }
  0xa1   :  { %v112_v28 = vadd.f32 %v104_v41, %v88_v26  ;;  %v111_v45 = vadd.f32 %v103_v43, %v87_v29  ;;  %v140_v46 = vmax.f32 %v132_v23, -240.0  ;;  %v138_v47 = vmax.f32 %v130_v24, -240.0 }
  0xa2   :  { %v438_v48 = vadd.f32 16.0, %v179_v14  ;;  %v436_v49 = vadd.f32 16.0, %v177_v44  ;;  %v158_v50 = vfloor.f32 %v150_v27  ;;  %v165_v52 = vmul.f32 -16.0, %v157_v22 }
  0xa3   :  { %v136_v53 = vsub.f32 %v112_v28, %v128_v42  ;;  %v135_v54 = vsub.f32 %v111_v45, %v127_v25  ;;  %v148_v55 = vmul.f32 -0.0625, %v140_v46  ;;  %v146_v56 = vmul.f32 -0.0625, %v138_v47 }
  0xa4   :  { %v513_v57 = vpop.eup %512  ;;  %v166_v58 = vmul.f32 -16.0, %v158_v50  ;;  %v198_v59 = vsub.f32 15.0, %v158_v50  ;;  %v173_v0 = vsub.f32 %v141_v61, %v165_v52  ;;  %v197_v15 = vsub.f32 15.0, %v157_v22 }
  0xa5   :  { %v211_v60 = vmul.f32 %v513_v57, %v438_v48  ;;  %v156_v62 = vfloor.f32 %v148_v55  ;;  %v154_v63 = vfloor.f32 %v146_v56  ;;  %v143_v3 = vmax.f32 %v135_v54, -240.0 }
  0xa6   :  { %v515_v1 = vpop.eup %514  ;;  %v174_v2 = vsub.f32 %v142_v40, %v166_v58  ;;  %516 = vpow2.f32 %v198_v59  ;;  %v144_v4 = vmax.f32 %v136_v53, -240.0  ;;  %v181_v29 = vmul.f32 0.5, %v173_v0 }
  0xa7   :  { %v219_v5 = vfloor.f32 %v211_v60  ;;  %v209_v6 = vmul.f32 %v515_v1, %v436_v49  ;;  %v164_v7 = vmul.f32 -16.0, %v156_v62  ;;  %v196_v8 = vsub.f32 15.0, %v156_v62 }
  0xa8   :  { %v182_v11 = vmul.f32 0.5, %v174_v2  ;;  %v162_v12 = vmul.f32 -16.0, %v154_v63  ;;  %v194_v13 = vsub.f32 15.0, %v154_v63  ;;  %v151_v18 = vmul.f32 -0.0625, %v143_v3 }
  0xa9   :  { %v676_v9 = vmax.f32 %v219_v5, 0.0  ;;  %v217_v16 = vfloor.f32 %v209_v6  ;;  %v172_v17 = vsub.f32 %v140_v46, %v164_v7  ;;  %518 = vpow2.f32 %v196_v8 }
  0xaa   :  { %v441_v51 = vadd.f32 16.0, %v182_v11  ;;  %v170_v61 = vsub.f32 %v138_v47, %v162_v12  ;;  %520 = vpow2.f32 %v194_v13  ;;  %v152_v20 = vmul.f32 -0.0625, %v144_v4 }
  0xab   :  { %237 = vadd.xlane.f32.xlu1 %v676_v9  ;;  %v679_v19 = vmax.f32 %v217_v16, 0.0  ;;  %v180_v10 = vmul.f32 0.5, %v172_v17  ;;  %522 = vpow2.f32 %v197_v15  ;;  %v159_v24 = vfloor.f32 %v151_v18 }
  0xac   :  { %v517_v21 = vpop.eup %516  ;;  %v178_v23 = vmul.f32 0.5, %v170_v61  ;;  %v160_v30 = vfloor.f32 %v152_v20  ;;  %v440_v43 = vadd.f32 16.0, %v181_v29 }
  0xad   :  { %233 = vadd.xlane.f32.xlu2 %v679_v19  ;;  %v214_v22 = vmul.f32 %v517_v21, %v441_v51  ;;  %v439_v26 = vadd.f32 16.0, %v180_v10  ;;  %v167_v32 = vmul.f32 -16.0, %v159_v24  ;;  %v199_v33 = vsub.f32 15.0, %v159_v24 }
  0xae   :  { %v437_v31 = vadd.f32 16.0, %v178_v23  ;;  %v168_v36 = vmul.f32 -16.0, %v160_v30  ;;  %v200_v40 = vsub.f32 15.0, %v160_v30 }
  0xaf   :  { %v519_v34 = vpop.eup %518  ;;  %v222_v35 = vfloor.f32 %v214_v22  ;;  %v175_v39 = vsub.f32 %v143_v3, %v167_v32  ;;  %524 = vpow2.f32 %v199_v33 }
  0xb0   :  { %v521_v37 = vpop.eup %520  ;;  %v212_v38 = vmul.f32 %v519_v34, %v439_v26  ;;  %v176_v25 = vsub.f32 %v144_v4, %v168_v36  ;;  %526 = vpow2.f32 %v200_v40 }
  0xb1   :  { %v682_v41 = vmax.f32 %v222_v35, 0.0  ;;  %v210_v42 = vmul.f32 %v521_v37, %v437_v31  ;;  %v523_v14 = vpop.eup %522  ;;  %v183_v27 = vmul.f32 0.5, %v175_v39 }
  0xb2   :  { %v220_v44 = vfloor.f32 %v212_v38  ;;  %v213_v48 = vmul.f32 %v523_v14, %v440_v43  ;;  %v184_v49 = vmul.f32 0.5, %v176_v25 }
  0xb3   :  { %243 = vadd.xlane.f32.xlu1 %v682_v41  ;;  %v218_v28 = vfloor.f32 %v210_v42  ;;  %v442_v46 = vadd.f32 16.0, %v183_v27 }
  0xb4   :  { %v685_v45 = vmax.f32 %v220_v44, 0.0  ;;  %v221_v53 = vfloor.f32 %v213_v48  ;;  %v443_v55 = vadd.f32 16.0, %v184_v49 }
  0xb5   :  { %v687_v47 = vmax.f32 %v218_v28, 0.0  ;;  %v525_v50 = vpop.eup %524 }
  0xb6   :  { %239 = vadd.xlane.f32.xlu2 %v685_v45  ;;  %v215_v52 = vmul.f32 %v525_v50, %v442_v46  ;;  %v527_v56 = vpop.eup %526  ;;  %v693_v58 = vmax.f32 %v221_v53, 0.0 }
  0xb7   :  { %235 = vadd.xlane.f32.xlu0 %v687_v47  ;;  %v216_v59 = vmul.f32 %v527_v56, %v443_v55 }
  0xb8   :  { %v223_v54 = vfloor.f32 %v215_v52 }
  0xb9   :  { %v224_v60 = vfloor.f32 %v216_v59 }
  0xba   :  { %v691_v57 = vmax.f32 %v223_v54, 0.0 }
  0xbb   :  { %v697_v62 = vmax.f32 %v224_v60, 0.0 }
  0xbe   :  { %245 = vadd.xlane.f32.xlu2 %v691_v57 }
  0xbf   :  { %241 = vadd.xlane.f32.xlu0 %v693_v58 }
  0xc7   :  { %247 = vadd.xlane.f32.xlu0 %v697_v62 }
 0x11e   :  { %v238_v63 = vpop.xlane.xlu1 %237 }
 0x11f   :  { %v251_v0 = vmin.f32 %v238_v63, 2.1474836e+09 }
 0x120   :  { %v234_v1 = vpop.xlane.xlu2 %233 }
 0x121   :  { %528 = vrcp.f32 %v251_v0  ;;  %v249_v2 = vmin.f32 %v234_v1, 2.1474836e+09  ;;  %v296_v5 = vand.u32 2147483647, %v251_v0  ;;  %v298_v8 = vand.u32 2147483648, %v251_v0 }
 0x122   :  { %vm292_vm8 = vweird.f32 %v251_v0 }
 0x123   :  { %530 = vrcp.f32 %v249_v2  ;;  %v266_v15 = vand.u32 2147483647, %v249_v2  ;;  %v268_v16 = vand.u32 2147483648, %v249_v2  ;;  %vm705_vm9 = vcmp.eq.f32.partialorder %v296_v5, 8.507059e+37 }
 0x124   :  { %v299_v21 = vor.u32 1.1754944e-38, %v298_v8  ;;  %vm262_vm11 = vweird.f32 %v249_v2 }
 0x125   :  { %vm714_vm12 = vcmp.eq.f32.partialorder %v266_v15, 8.507059e+37  ;;  %v269_v30 = vor.u32 1.1754944e-38, %v268_v16 }
 0x126   :  { %v244_v3 = vpop.xlane.xlu1 %243 }
 0x127   :  { %v529_v4 = vpop.eup %528  ;;  %v700_v6 = vmin.f32 %v244_v3, 2.1474836e+09 }
 0x128   :  { %v288_v7 = vmul.f32 %v529_v4, %v251_v0  ;;  %vm293_vm10 = vweird.f32 %v529_v4 }
 0x129   :  { %532 = vrcp.f32 %v700_v6  ;;  %v240_v11 = vpop.xlane.xlu2 %239  ;;  %v531_v12 = vpop.eup %530  ;;  %v341_v20 = vand.u32 2147483647, %v700_v6  ;;  %v343_v24 = vand.u32 2147483648, %v700_v6  ;;  %vm294_vm13 = vmor %vm292_vm8, %vm293_vm10  ;;  %vm337_vm15 = vweird.f32 %v700_v6 }
 0x12a   :  { %v289_v13 = vsub.f32 1.0, %v288_v7  ;;  %v703_v17 = vmin.f32 %v240_v11, 2.1474836e+09  ;;  %v236_v51 = vpop.xlane.xlu0 %235  ;;  %v258_v18 = vmul.f32 %v531_v12, %v249_v2  ;;  %vm263_vm14 = vweird.f32 %v531_v12 }
 0x12b   :  { %v712_v22 = vmin.f32 %v236_v51, 2.1474836e+09  ;;  %vm723_vm0 = vcmp.eq.f32.partialorder %v341_v20, 8.507059e+37  ;;  %v344_v39 = vor.u32 1.1754944e-38, %v343_v24  ;;  %vm264_vm1 = vmor %vm262_vm11, %vm263_vm14 }
 0x12c   :  { %v290_v10 = vmul.f32 %v529_v4, %v289_v13  ;;  %534 = vrcp.f32 %v703_v17  ;;  %v259_v23 = vsub.f32 1.0, %v258_v18  ;;  %v311_v33 = vand.u32 2147483647, %v703_v17 }
 0x12d   :  { %536 = vrcp.f32 %v712_v22  ;;  %v313_v40 = vand.u32 2147483648, %v703_v17  ;;  %vm307_vm2 = vweird.f32 %v703_v17  ;;  %vm277_vm5 = vweird.f32 %v712_v22 }
 0x12e   :  { %v291_v26 = vadd.f32 %v529_v4, %v290_v10  ;;  %v260_v32 = vmul.f32 %v531_v12, %v259_v23  ;;  %vm735_vm4 = vcmp.eq.f32.partialorder %v311_v33, 8.507059e+37  ;;  %v281_v0 = vand.u32 2147483647, %v712_v22 }
 0x12f   :  { %v533_v31 = vpop.eup %532  ;;  %v314_v56 = vor.u32 1.1754944e-38, %v313_v40  ;;  %v283_v3 = vand.u32 2147483648, %v712_v22 }
 0x130   :  { %v295_v34 = vsel %vm294_vm13, %v529_v4, %v291_v26  ;;  %v333_v35 = vmul.f32 %v533_v31, %v700_v6  ;;  %v261_v38 = vadd.f32 %v531_v12, %v260_v32  ;;  %vm338_vm3 = vweird.f32 %v533_v31 }
 0x131   :  { %v300_v37 = vsel %vm705_vm9, %v299_v21, %v295_v34  ;;  %v246_v42 = vpop.xlane.xlu2 %245  ;;  %vm339_vm6 = vmor %vm337_vm15, %vm338_vm3  ;;  %vm758_vm10 = vcmp.eq.f32.partialorder %v281_v0, 8.507059e+37  ;;  %v284_v24 = vor.u32 1.1754944e-38, %v283_v3 }
 0x132   :  { %v535_v43 = vpop.eup %534  ;;  %v301_v25 = vmul.f32 2.1474836e+09, %v300_v37  ;;  %v334_v14 = vsub.f32 1.0, %v333_v35  ;;  %v732_v44 = vmin.f32 %v246_v42, 2.1474836e+09  ;;  %v242_v27 = vpop.xlane.xlu0 %241  ;;  %v265_v28 = vsel %vm264_vm1, %v531_v12, %v261_v38 }
 0x133   :  { %v303_v46 = vmul.f32 %v535_v43, %v703_v17  ;;  %v270_v50 = vsel %vm714_vm12, %v269_v30, %v265_v28  ;;  %v537_v53 = vpop.eup %536  ;;  %vm308_vm7 = vweird.f32 %v535_v43  ;;  %v750_v8 = vmin.f32 %v242_v27, 2.1474836e+09 }
 0x134   :  { %v379_v49 = vfloor.f32 %v301_v25  ;;  %v335_v52 = vmul.f32 %v533_v31, %v334_v14  ;;  %538 = vrcp.f32 %v732_v44  ;;  %v271_v54 = vmul.f32 2.1474836e+09, %v270_v50  ;;  %vm309_vm9 = vmor %vm307_vm2, %vm308_vm7 }
 0x135   :  { %v304_v55 = vsub.f32 1.0, %v303_v46  ;;  %v273_v63 = vmul.f32 %v537_v53, %v712_v22  ;;  %vm278_vm8 = vweird.f32 %v537_v53  ;;  %540 = vrcp.f32 %v750_v8 }
 0x136   :  { %v387_v59 = vmul.f32 1.5258789e-05, %v379_v49  ;;  %v336_v60 = vadd.f32 %v533_v31, %v335_v52  ;;  %v377_v1 = vfloor.f32 %v271_v54  ;;  %vm279_vm11 = vmor %vm277_vm5, %vm278_vm8  ;;  %v356_v30 = vand.u32 2147483647, %v732_v44 }
 0x137   :  { %v305_v2 = vmul.f32 %v535_v43, %v304_v55  ;;  %v274_v7 = vsub.f32 1.0, %v273_v63  ;;  %v358_v33 = vand.u32 2147483648, %v732_v44  ;;  %vm352_vm13 = vweird.f32 %v732_v44 }
 0x138   :  { %v395_v4 = vmul.f32 %v387_v59, %v676_v9  ;;  %v340_v5 = vsel %vm339_vm6, %v533_v31, %v336_v60  ;;  %v385_v11 = vmul.f32 1.5258789e-05, %v377_v1  ;;  %vm357_vm15 = vcmp.eq.f32.partialorder %v356_v30, 8.507059e+37 }
 0x139   :  { %v345_v12 = vsel %vm723_vm0, %v344_v39, %v340_v5  ;;  %v306_v13 = vadd.f32 %v535_v43, %v305_v2  ;;  %v275_v51 = vmul.f32 %v537_v53, %v274_v7  ;;  %v359_v27 = vor.u32 1.1754944e-38, %v358_v33 }
 0x13a   :  { %v539_v15 = vpop.eup %538  ;;  %v403_v16 = vfloor.f32 %v395_v4  ;;  %v346_v6 = vmul.f32 2.1474836e+09, %v345_v12  ;;  %v393_v9 = vmul.f32 %v385_v11, %v679_v19  ;;  %v248_v20 = vpop.xlane.xlu0 %247  ;;  %v326_v50 = vand.u32 2147483647, %v750_v8 }
 0x13b   :  { %v310_v61 = vsel %vm309_vm9, %v535_v43, %v306_v13  ;;  %v348_v10 = vmul.f32 %v539_v15, %v732_v44  ;;  %v276_v17 = vadd.f32 %v537_v53, %v275_v51  ;;  %v770_v34 = vmin.f32 %v248_v20, 2.1474836e+09  ;;  %v541_v38 = vpop.eup %540 }
 0x13c   :  { %411 = vst [vmem:[#allocation5 + $0x10] sm:$0xff] %v403_v16  ;;  %v382_v21 = vfloor.f32 %v346_v6  ;;  %v315_v23 = vsel %vm735_vm4, %v314_v56, %v310_v61  ;;  %v401_v26 = vfloor.f32 %v393_v9  ;;  %vm353_vm12 = vweird.f32 %v539_v15 }
 0x13d   :  { %v316_v29 = vmul.f32 2.1474836e+09, %v315_v23  ;;  %v349_v19 = vsub.f32 1.0, %v348_v10  ;;  %v280_v32 = vsel %vm279_vm11, %v537_v53, %v276_v17  ;;  %542 = vrcp.f32 %v770_v34  ;;  %vm354_vm14 = vmor %vm352_vm13, %vm353_vm12 }
 0x13e   :  { %v390_v31 = vmul.f32 1.5258789e-05, %v382_v21  ;;  %409 = vst [vmem:[#allocation5] sm:$0xff] %v401_v26  ;;  %v285_v36 = vsel %vm758_vm10, %v284_v24, %v280_v32  ;;  %v318_v43 = vmul.f32 %v541_v38, %v750_v8  ;;  %v328_v52 = vand.u32 2147483648, %v750_v8 }
 0x13f   :  { %v380_v35 = vfloor.f32 %v316_v29  ;;  %v350_v37 = vmul.f32 %v539_v15, %v349_v19  ;;  %v286_v39 = vmul.f32 2.1474836e+09, %v285_v36  ;;  %vm323_vm0 = vweird.f32 %v541_v38 }
 0x140   :  { %v398_v22 = vmul.f32 %v390_v31, %v682_v41  ;;  %v319_v48 = vsub.f32 1.0, %v318_v43  ;;  %vm322_vm1 = vweird.f32 %v750_v8  ;;  %v329_v0 = vor.u32 1.1754944e-38, %v328_v52 }
 0x141   :  { %v388_v40 = vmul.f32 1.5258789e-05, %v380_v35  ;;  %v351_v42 = vadd.f32 %v539_v15, %v350_v37  ;;  %v378_v14 = vfloor.f32 %v286_v39  ;;  %vm324_vm2 = vmor %vm322_vm1, %vm323_vm0  ;;  %vm327_vm3 = vcmp.eq.f32.partialorder %v326_v50, 8.507059e+37 }
 0x142   :  { %v406_v25 = vfloor.f32 %v398_v22  ;;  %v320_v54 = vmul.f32 %v541_v38, %v319_v48  ;;  %v371_v5 = vand.u32 2147483647, %v770_v34  ;;  %vm367_vm5 = vweird.f32 %v770_v34 }
 0x143   :  { %v396_v28 = vmul.f32 %v388_v40, %v685_v45  ;;  %v355_v46 = vsel %vm354_vm14, %v539_v15, %v351_v42  ;;  %v386_v41 = vmul.f32 1.5258789e-05, %v378_v14  ;;  %v543_v55 = vpop.eup %542 }
 0x144   :  { %414 = vst [vmem:[#allocation5 + $0x28] sm:$0xff] %v406_v25  ;;  %v360_v49 = vsel %vm357_vm15, %v359_v27, %v355_v46  ;;  %v321_v45 = vadd.f32 %v541_v38, %v320_v54  ;;  %v363_v60 = vmul.f32 %v543_v55, %v770_v34  ;;  %vm368_vm4 = vweird.f32 %v543_v55 }
 0x145   :  { %v404_v53 = vfloor.f32 %v396_v28  ;;  %v361_v44 = vmul.f32 2.1474836e+09, %v360_v49  ;;  %v394_v56 = vmul.f32 %v386_v41, %v687_v47  ;;  %v373_v47 = vand.u32 2147483648, %v770_v34  ;;  %vm369_vm6 = vmor %vm367_vm5, %vm368_vm4 }
 0x146   :  { %v325_v2 = vsel %vm324_vm2, %v541_v38, %v321_v45  ;;  %v364_v3 = vsub.f32 1.0, %v363_v60  ;;  %vm372_vm7 = vcmp.eq.f32.partialorder %v371_v5, 8.507059e+37 }
 0x147   :  { %412 = vst [vmem:[#allocation5 + $0x18] sm:$0xff] %v404_v53  ;;  %v383_v59 = vfloor.f32 %v361_v44  ;;  %v402_v63 = vfloor.f32 %v394_v56  ;;  %v330_v4 = vsel %vm327_vm3, %v329_v0, %v325_v2  ;;  %v374_v16 = vor.u32 1.1754944e-38, %v373_v47 }
 0x148   :  { %v331_v11 = vmul.f32 2.1474836e+09, %v330_v4  ;;  %v365_v12 = vmul.f32 %v543_v55, %v364_v3 }
 0x149   :  { %v391_v1 = vmul.f32 1.5258789e-05, %v383_v59  ;;  %410 = vst [vmem:[#allocation5 + $0x8] sm:$0xff] %v402_v63 }
 0x14a   :  { %v381_v13 = vfloor.f32 %v331_v11  ;;  %v366_v15 = vadd.f32 %v543_v55, %v365_v12 }
 0x14b   :  { %v399_v7 = vmul.f32 %v391_v1, %v691_v57 }
 0x14c   :  { %v389_v6 = vmul.f32 1.5258789e-05, %v381_v13  ;;  %v370_v51 = vsel %vm369_vm6, %v543_v55, %v366_v15 }
 0x14d   :  { %v407_v8 = vfloor.f32 %v399_v7  ;;  %v375_v9 = vsel %vm372_vm7, %v374_v16, %v370_v51 }
 0x14e   :  { %v397_v61 = vmul.f32 %v389_v6, %v693_v58  ;;  %v376_v18 = vmul.f32 2.1474836e+09, %v375_v9 }
 0x14f   :  { %415 = vst [vmem:[#allocation5 + $0x30] sm:$0xff] %v407_v8 }
 0x150   :  { %v405_v10 = vfloor.f32 %v397_v61  ;;  %v384_v57 = vfloor.f32 %v376_v18 }
 0x152   :  { %413 = vst [vmem:[#allocation5 + $0x20] sm:$0xff] %v405_v10  ;;  %v392_v20 = vmul.f32 1.5258789e-05, %v384_v57 }
 0x154   :  { %v400_v21 = vmul.f32 %v392_v20, %v697_v62 }
 0x156   :  { %v408_v23 = vfloor.f32 %v400_v21 }
 0x158   :  { %416 = vst [vmem:[#allocation5 + $0x38] sm:$0xff] %v408_v23 }
 0x159   :  { %429 = dma.vmem_to_hbm [thread:$0]  %s422_s13, 1024, %s424_s16, [#allocation4], %s597_s11, %s597_s11, %s598_s12  }
 0x15a   :  { %594 = dma.done.wait [#allocation4], 1024  }
 0x15b   :  { %595 = vsyncadd [#allocation4], 4294966272 }
 0x15c   :  { %434 = vsyncpa [#allocation3], 1 }
 0x15d   :  { %435 = vsyncpa [#allocation4], 1 }

</bundles_post_ra>
